<compile_context>
chip_gen: v6e
topology: v6e:2x2x1
jax: 0.10.0
libtpu: 0.0.40
codegen_flags: <defaults>
</compile_context>

<pallas_src>
import functools

import jax
import jax.numpy as jnp
from jax.experimental import pallas as pl
from jax.experimental.pallas import tpu as pltpu

LANES = 128
SUBLANES = 8
DEFAULT_TILE_ROWS = 2048       # big-param tile: (2048,128) f32 = 1 MiB / stream
DEFAULT_SMALL_TILE_ROWS = 64   # small-param tile: at most 8 KiB pad per tensor
SUB_ROWS = 128                 # in-kernel sub-chunk; bounds temp/vreg pressure
STATE_DTYPE = jnp.bfloat16     # static fisher / pnet slabs stored in bf16
VMEM_LIMIT_BYTES = 32 * 1024 * 1024


# --------------------------------------------------------------------------
# Kernel 1: cross-entropy (mean reduction, matching nn.CrossEntropyLoss),
# tiled over the batch with a resident (1,1) accumulator.
# --------------------------------------------------------------------------
def _ce_kernel(logits_ref, labels_ref, out_ref, *, inv_b):
    i = pl.program_id(0)

    @pl.when(i == 0)
    def _():
        out_ref[0, 0] = 0.0

    x = logits_ref[...].astype(jnp.float32)               # (TB, C)
    lab = labels_ref[...]                                  # (TB, 1) int32
    m = jnp.max(x, axis=-1, keepdims=True)                 # (TB, 1)
    lse = jnp.log(jnp.sum(jnp.exp(x - m), axis=-1, keepdims=True)) + m
    iota = jax.lax.broadcasted_iota(jnp.int32, x.shape, 1)
    onehot = (iota == lab).astype(jnp.float32)
    picked = jnp.sum(x * onehot, axis=-1, keepdims=True)   # (TB, 1)
    out_ref[0, 0] += jnp.sum(lse - picked)

    @pl.when(i == pl.num_programs(0) - 1)
    def _():
        out_ref[0, 0] = out_ref[0, 0] * inv_b


def cross_entropy(logits, labels, tile_b=128):
    B, C = logits.shape
    tb = tile_b if (B > tile_b and B % tile_b == 0) else B
    labels2d = labels.astype(jnp.int32).reshape(B, 1)
    kernel = functools.partial(_ce_kernel, inv_b=1.0 / B)
    out = pl.pallas_call(
        kernel,
        out_shape=jax.ShapeDtypeStruct((1, 1), jnp.float32),
        grid=(B // tb,),
        in_specs=[
            pl.BlockSpec((tb, C), lambda i: (i, 0)),
            pl.BlockSpec((tb, 1), lambda i: (i, 0)),
        ],
        out_specs=pl.BlockSpec((1, 1), lambda i: (0, 0)),
        compiler_params=pltpu.CompilerParams(dimension_semantics=("arbitrary",)),
    )(logits, labels2d)
    return out[0, 0]


# --------------------------------------------------------------------------
# Packing: flatten every param, zero-pad to whole (tile_rows, 128) tiles,
# concatenate into one lane-dense slab.
# --------------------------------------------------------------------------
def _pack_params(params, tile_rows, dtype):
    """Returns (slab [rows_total, 128] of `dtype`, tiles_per_param list)."""
    assert tile_rows % SUBLANES == 0
    chunks, tiles_per = [], []
    for p in params:
        n = int(p.size)
        if n == 0:
            raise ValueError("EWC: zero-size parameters are not supported")
        rows = -(-n // LANES)
        rows = -(-rows // tile_rows) * tile_rows
        flat = jnp.asarray(p, jnp.float32).reshape(-1)
        padded = jnp.pad(flat, (0, rows * LANES - n))   # pad value MUST stay 0
        chunks.append(padded.astype(dtype).reshape(rows, LANES))
        tiles_per.append(rows // tile_rows)
    return jnp.concatenate(chunks, axis=0), tiles_per


# --------------------------------------------------------------------------
# Kernel 2 (fused): per-(param, task) sum of squares of fisher * (p1 - p2)
# --------------------------------------------------------------------------
def _fused_sumsq(seg_ids, reset_flags, p1_slab, fis_slab, pnet_slab,
                 n_params, tile_rows):
    n_tasks, rows_total, _ = fis_slab.shape
    num_tiles = rows_total // tile_rows
    sub_rows = min(SUB_ROWS, tile_rows)
    assert tile_rows % sub_rows == 0 and sub_rows % SUBLANES == 0
    n_sub = tile_rows // sub_rows

    def kernel(reset_ref, seg_ref, p1_ref, fis_ref, pnet_ref, out_ref):
        del seg_ref  # only consumed by the output index_map
        i = pl.program_id(0)

        # First tile of a param segment: zero the resident accumulator block.
        @pl.when(reset_ref[i] == 1)
        def _():
            out_ref[...] = jnp.zeros_like(out_ref)

        # Stream the tile in sub_rows-row slices: no full-tile temporaries,
        # p1 slice loaded once and reused across the (static) task loop.
        @pl.loop(0, n_sub)
        def _(s):
            r0 = pl.multiple_of(s * sub_rows, sub_rows)
            p1 = p1_ref[pl.ds(r0, sub_rows), :].astype(jnp.float32)
            for t in range(n_tasks):                       # static unroll
                fis = fis_ref[t, pl.ds(r0, sub_rows), :].astype(jnp.float32)
                dlt = p1 - pnet_ref[t, pl.ds(r0, sub_rows), :].astype(jnp.float32)
                v = fis * dlt
                # (sub_rows,128) -> (8,128) partial sums: pure VPU adds.
                part = (v * v).reshape(sub_rows // SUBLANES, SUBLANES, LANES).sum(axis=0)
                out_ref[0, t] += part

    grid_spec = pltpu.PrefetchScalarGridSpec(
        num_scalar_prefetch=2,
        grid=(num_tiles,),
        in_specs=[
            # p1: block index independent of the task loop -> streamed once.
            pl.BlockSpec((tile_rows, LANES), lambda i, rst, seg: (i, 0)),
            pl.BlockSpec((n_tasks, tile_rows, LANES), lambda i, rst, seg: (0, i, 0)),
            pl.BlockSpec((n_tasks, tile_rows, LANES), lambda i, rst, seg: (0, i, 0)),
        ],
        # Data-dependent output block: stays resident across a segment's tiles.
        out_specs=pl.BlockSpec((1, n_tasks, SUBLANES, LANES),
                               lambda i, rst, seg: (seg[i], 0, 0, 0)),
    )
    return pl.pallas_call(
        kernel,
        out_shape=jax.ShapeDtypeStruct((n_params, n_tasks, SUBLANES, LANES),
                                       jnp.float32),
        grid_spec=grid_spec,
        compiler_params=pltpu.CompilerParams(
            # TODO(synk): on v7x evaluate a 2-D (param, tile) grid with a
            # 'parallel' param axis so both TensorCores issue DMAs.
            dimension_semantics=("arbitrary",),
            vmem_limit_bytes=VMEM_LIMIT_BYTES),
    )(reset_flags, seg_ids, p1_slab, fis_slab, pnet_slab)


# --------------------------------------------------------------------------
# EWC: init (pack static state once, in bf16) + per-forward packing + forward
# --------------------------------------------------------------------------
def _tiles_for(n_elems, tile_rows):
    rows = -(-n_elems // LANES)
    return -(-rows // tile_rows)


def ewc_init(fishers, pnets, lam,
             tile_rows=DEFAULT_TILE_ROWS,
             small_tile_rows=DEFAULT_SMALL_TILE_ROWS):
    """Mirror of EWC.__init__: pack the static fisher / pnet tensors once."""
    sizes = [int(p.size) for p in fishers[0]]
    for n in sizes:
        if n == 0:
            raise ValueError("EWC: zero-size parameters are not supported")

    # Route each parameter to the big-tile or small-tile slab by row count, so
    # small tensors are never padded up to a full big tile.
    rows = [-(-n // LANES) for n in sizes]
    big_idx = [i for i, r in enumerate(rows) if r >= tile_rows]
    small_idx = [i for i, r in enumerate(rows) if r < tile_rows]

    def _build(idx, tr):
        if not idx:
            return None
        fis = jnp.stack([_pack_params([f[i] for i in idx], tr, STATE_DTYPE)[0]
                         for f in fishers])
        pnt = jnp.stack([_pack_params([p[i] for i in idx], tr, STATE_DTYPE)[0]
                         for p in pnets])
        seg, rst = [], []
        for p_pos, i in enumerate(idx):
            nt = _tiles_for(sizes[i], tr)
            seg.extend([p_pos] * nt)
            rst.extend([1] + [0] * (nt - 1))
        return dict(fis=fis, pnet=pnt,
                    seg=jnp.asarray(seg, jnp.int32),
                    reset=jnp.asarray(rst, jnp.int32),
                    n_params=len(idx), tile_rows=tr, idx=idx)

    return dict(big=_build(big_idx, tile_rows),
                small=_build(small_idx, small_tile_rows),
                lam=lam)


def pack_net(net_params, state):
    """Pack the live model's parameters into the slab layout.

    TODO(synk): in a real training loop, keep the model in this slab layout
    persistently (update the slab inside the optimizer / alias it) instead of
    re-running the pad+concat pass every forward.
    """
    slabs = {}
    for key in ("big", "small"):
        sub = state[key]
        slabs[key] = None if sub is None else _pack_params(
            [net_params[i] for i in sub["idx"]], sub["tile_rows"], jnp.float32)[0]
    return slabs


def ewc_forward(outputs, labels, net_slabs, state):
    """Equivalent of EWC.forward(outputs, labels, net)."""
    reg = jnp.float32(0.0)
    for key in ("big", "small"):
        sub = state[key]
        if sub is None:
            continue
        partials = _fused_sumsq(sub["seg"], sub["reset"], net_slabs[key],
                                sub["fis"], sub["pnet"],
                                sub["n_params"], sub["tile_rows"])
        sumsq = partials.sum(axis=(2, 3))                 # (n_params, n_tasks)
        # TODO(synk): sqrt has an undefined gradient at exactly 0; add eps if a
        # backward pass is ever required.
        reg = reg + jnp.sum(jnp.sqrt(sumsq))
    ce = cross_entropy(outputs, labels)
    return ce + state["lam"] * reg


# Pure-JAX reference for a sanity check.
def _ewc_ref(outputs, labels, net_params, fishers, pnets, lam):
    reg = 0.0
    for fis, pnet in zip(fishers, pnets):
        for cf, p1, p2 in zip(fis, net_params, pnet):
            reg = reg + jnp.linalg.norm((cf * (p1 - p2)).reshape(-1))
    x = outputs.astype(jnp.float32)
    lse = jax.scipy.special.logsumexp(x, axis=-1)
    picked = jnp.take_along_axis(x, labels[:, None], axis=-1)[:, 0]
    ce = jnp.mean(lse - picked)
    return ce + lam * reg


if __name__ == "__main__":
    key = jax.random.PRNGKey(0)

    B, C = 8, 10            # batch, num classes
    lam = 0.5
    n_tasks = 2
    # Small demo shapes chosen so both the big-tile slab (multi-param,
    # multi-tile resident accumulation) and the small-tile slab are exercised
    # at demo tile sizes (tile_rows=256 / small_tile_rows=64 below).
    param_shapes = [(32, 16), (32,), (C, 32), (C,), (300, 256), (260, 128), (130, 70)]

    n_keys = 2 + len(param_shapes) * (1 + 2 * n_tasks)
    keys = iter(jax.random.split(key, n_keys))

    outputs = jax.random.normal(next(keys), (B, C), dtype=jnp.float32)
    labels = jax.random.randint(next(keys), (B,), 0, C, dtype=jnp.int32)

    net_params = [jax.random.normal(next(keys), s, dtype=jnp.float32) * 0.1
                  for s in param_shapes]
    fishers, pnets = [], []
    for _ in range(n_tasks):
        fishers.append([jnp.abs(jax.random.normal(next(keys), s, dtype=jnp.float32))
                        for s in param_shapes])
        pnets.append([jax.random.normal(next(keys), s, dtype=jnp.float32) * 0.1
                      for s in param_shapes])

    # Static packing (done once, bf16 state).  Demo tile sizes are small so the
    # multi-tile / multi-segment paths are covered with toy tensors; production
    # default is tile_rows=2048.
    state = ewc_init(fishers, pnets, lam, tile_rows=256, small_tile_rows=64)
    # In a training loop, keep net params in slab layout persistently.
    net_slabs = pack_net(net_params, state)

    loss = ewc_forward(outputs, labels, net_slabs, state)
    loss = jax.block_until_ready(loss)

    # Reference uses the same bf16-rounded static state the kernel stores.
    _q = lambda t: t.astype(jnp.bfloat16).astype(jnp.float32)
    ref = _ewc_ref(outputs, labels, net_params,
                   [[_q(t) for t in f] for f in fishers],
                   [[_q(t) for t in p] for p in pnets], lam)
    assert jnp.allclose(loss, ref, rtol=1e-4, atol=1e-4), (loss, ref)

    print("KERNEL_OK")
</pallas_src>

<mosaic_0001>
module attributes {stable_mosaic.version = 11 : i64} {
  func.func @kernel(%arg0: i32, %arg1: memref<5xi32, #tpu.memory_space<smem>>, %arg2: memref<5xi32, #tpu.memory_space<smem>>, %arg3: memref<256x128xf32, #tpu.memory_space<vmem>>, %arg4: memref<2x256x128xbf16, #tpu.memory_space<vmem>>, %arg5: memref<2x256x128xbf16, #tpu.memory_space<vmem>>, %arg6: memref<1x2x8x128xf32, #tpu.memory_space<vmem>>) attributes {dimension_semantics = [#tpu.dimension_semantics<arbitrary>], iteration_bounds = array<i64: 5>, scalar_prefetch = 2 : i64, scratch_operands = 0 : i64, tpu.core_type = #tpu.core_type<tc>, window_params = [{transform_indices = @transform_0, window_bounds = array<i64: 256, 128>}, {transform_indices = @transform_1, window_bounds = array<i64: 2, 256, 128>}, {transform_indices = @transform_2, window_bounds = array<i64: 2, 256, 128>}, {transform_indices = @transform_3, window_bounds = array<i64: 1, 2, 8, 128>}]} {
    %0 = arith.index_cast %arg0 : i32 to index
    %1 = memref.load %arg1[%0] : memref<5xi32, #tpu.memory_space<smem>>
    %c1_i32 = arith.constant 1 : i32
    %2 = arith.cmpi eq, %1, %c1_i32 : i32
    %3 = arith.extui %2 : i1 to i32
    %c0_i32 = arith.constant 0 : i32
    %4 = arith.cmpi ne, %3, %c0_i32 : i32
    scf.if %4 {
      %cst = arith.constant 0.000000e+00 : f32
      %6 = vector.broadcast %cst : f32 to vector<1x2x8x128xf32>
      %c0 = arith.constant 0 : index
      %c0_3 = arith.constant 0 : index
      %c0_4 = arith.constant 0 : index
      %c0_5 = arith.constant 0 : index
      %7 = vector.load %arg6[%c0, %c0_3, %c0_4, %c0_5] : memref<1x2x8x128xf32, #tpu.memory_space<vmem>>, vector<1x2x8x128xf32>
      tpu.vector_store %arg6[%c0, %c0_3, %c0_4, %c0_5], %6 {strides = array<i32>} : memref<1x2x8x128xf32, #tpu.memory_space<vmem>>, vector<1x2x8x128xf32>,
    } else {
    }
    %c0_i32_0 = arith.constant 0 : i32
    %c2_i32 = arith.constant 2 : i32
    %5 = arith.addi %c0_i32_0, %c2_i32 : i32
    %c1_i32_1 = arith.constant 1 : i32
    scf.for %arg7 = %c0_i32_0 to %5 step %c1_i32_1  : i32 {
      %c1_i32_3 = arith.constant 1 : i32
      %6 = arith.muli %arg7, %c1_i32_3 : i32
      %c0_i32_4 = arith.constant 0 : i32
      %7 = arith.addi %c0_i32_4, %6 : i32
      %c128_i32 = arith.constant 128 : i32
      %8 = arith.muli %7, %c128_i32 : i32
      %9 = tpu.assume_multiple %8, 128 : i32
      %10 = arith.index_cast %9 : i32 to index
      %c0 = arith.constant 0 : index
      %11 = vector.load %arg3[%10, %c0] : memref<256x128xf32, #tpu.memory_space<vmem>>, vector<128x128xf32>
      %c0_5 = arith.constant 0 : index
      %12 = arith.index_cast %9 : i32 to index
      %c0_6 = arith.constant 0 : index
      %13 = vector.load %arg4[%c0_5, %12, %c0_6] : memref<2x256x128xbf16, #tpu.memory_space<vmem>>, vector<1x128x128xbf16>
      %14 = vector.shape_cast %13 : vector<1x128x128xbf16> to vector<128x128xbf16>
      %15 = arith.extf %14 : vector<128x128xbf16> to vector<128x128xf32>
      %c0_7 = arith.constant 0 : index
      %16 = arith.index_cast %9 : i32 to index
      %c0_8 = arith.constant 0 : index
      %17 = vector.load %arg5[%c0_7, %16, %c0_8] : memref<2x256x128xbf16, #tpu.memory_space<vmem>>, vector<1x128x128xbf16>
      %18 = vector.shape_cast %17 : vector<1x128x128xbf16> to vector<128x128xbf16>
      %19 = arith.extf %18 : vector<128x128xbf16> to vector<128x128xf32>
      %20 = arith.subf %11, %19 : vector<128x128xf32>
      %21 = arith.mulf %15, %20 : vector<128x128xf32>
      %22 = arith.mulf %21, %21 : vector<128x128xf32>
      %23 = vector.shape_cast %22 : vector<128x128xf32> to vector<16x8x128xf32>
      %cst = arith.constant dense<0.000000e+00> : vector<8x128xf32>
      %24 = vector.multi_reduction <add>, %23, %cst [0] : vector<16x8x128xf32> to vector<8x128xf32>
      %c0_9 = arith.constant 0 : index
      %c0_10 = arith.constant 0 : index
      %c0_11 = arith.constant 0 : index
      %c0_12 = arith.constant 0 : index
      %25 = vector.load %arg6[%c0_9, %c0_10, %c0_11, %c0_12] : memref<1x2x8x128xf32, #tpu.memory_space<vmem>>, vector<1x1x8x128xf32>
      %26 = vector.shape_cast %25 : vector<1x1x8x128xf32> to vector<8x128xf32>
      %27 = arith.addf %26, %24 : vector<8x128xf32>
      %c0_13 = arith.constant 0 : index
      %c0_14 = arith.constant 0 : index
      %c0_15 = arith.constant 0 : index
      %c0_16 = arith.constant 0 : index
      %28 = vector.load %arg6[%c0_13, %c0_14, %c0_15, %c0_16] : memref<1x2x8x128xf32, #tpu.memory_space<vmem>>, vector<1x1x8x128xf32>
      %29 = vector.shape_cast %28 : vector<1x1x8x128xf32> to vector<8x128xf32>
      %30 = vector.shape_cast %27 : vector<8x128xf32> to vector<1x1x8x128xf32>
      tpu.vector_store %arg6[%c0_13, %c0_14, %c0_15, %c0_16], %30 {strides = array<i32>} : memref<1x2x8x128xf32, #tpu.memory_space<vmem>>, vector<1x1x8x128xf32>,
      %c1 = arith.constant 1 : index
      %31 = arith.index_cast %9 : i32 to index
      %c0_17 = arith.constant 0 : index
      %32 = vector.load %arg4[%c1, %31, %c0_17] : memref<2x256x128xbf16, #tpu.memory_space<vmem>>, vector<1x128x128xbf16>
      %33 = vector.shape_cast %32 : vector<1x128x128xbf16> to vector<128x128xbf16>
      %34 = arith.extf %33 : vector<128x128xbf16> to vector<128x128xf32>
      %c1_18 = arith.constant 1 : index
      %35 = arith.index_cast %9 : i32 to index
      %c0_19 = arith.constant 0 : index
      %36 = vector.load %arg5[%c1_18, %35, %c0_19] : memref<2x256x128xbf16, #tpu.memory_space<vmem>>, vector<1x128x128xbf16>
      %37 = vector.shape_cast %36 : vector<1x128x128xbf16> to vector<128x128xbf16>
      %38 = arith.extf %37 : vector<128x128xbf16> to vector<128x128xf32>
      %39 = arith.subf %11, %38 : vector<128x128xf32>
      %40 = arith.mulf %34, %39 : vector<128x128xf32>
      %41 = arith.mulf %40, %40 : vector<128x128xf32>
      %42 = vector.shape_cast %41 : vector<128x128xf32> to vector<16x8x128xf32>
      %cst_20 = arith.constant dense<0.000000e+00> : vector<8x128xf32>
      %43 = vector.multi_reduction <add>, %42, %cst_20 [0] : vector<16x8x128xf32> to vector<8x128xf32>
      %c0_21 = arith.constant 0 : index
      %c1_22 = arith.constant 1 : index
      %c0_23 = arith.constant 0 : index
      %c0_24 = arith.constant 0 : index
      %44 = vector.load %arg6[%c0_21, %c1_22, %c0_23, %c0_24] : memref<1x2x8x128xf32, #tpu.memory_space<vmem>>, vector<1x1x8x128xf32>
      %45 = vector.shape_cast %44 : vector<1x1x8x128xf32> to vector<8x128xf32>
      %46 = arith.addf %45, %43 : vector<8x128xf32>
      %c0_25 = arith.constant 0 : index
      %c1_26 = arith.constant 1 : index
      %c0_27 = arith.constant 0 : index
      %c0_28 = arith.constant 0 : index
      %47 = vector.load %arg6[%c0_25, %c1_26, %c0_27, %c0_28] : memref<1x2x8x128xf32, #tpu.memory_space<vmem>>, vector<1x1x8x128xf32>
      %48 = vector.shape_cast %47 : vector<1x1x8x128xf32> to vector<8x128xf32>
      %49 = vector.shape_cast %46 : vector<8x128xf32> to vector<1x1x8x128xf32>
      tpu.vector_store %arg6[%c0_25, %c1_26, %c0_27, %c0_28], %49 {strides = array<i32>} : memref<1x2x8x128xf32, #tpu.memory_space<vmem>>, vector<1x1x8x128xf32>,
    }
    %c2_i32_2 = arith.constant 2 : i32
    return
  }
  func.func @transform_0(%arg0: i32, %arg1: memref<5xi32, #tpu.memory_space<smem>>, %arg2: memref<5xi32, #tpu.memory_space<smem>>) -> (i32, i32) {
    %c0_i32 = arith.constant 0 : i32
    %c0_i32_0 = arith.constant 0 : i32
    return %arg0, %c0_i32 : i32, i32
  }
  func.func @transform_1(%arg0: i32, %arg1: memref<5xi32, #tpu.memory_space<smem>>, %arg2: memref<5xi32, #tpu.memory_space<smem>>) -> (i32, i32, i32) {
    %c0_i32 = arith.constant 0 : i32
    %c0_i32_0 = arith.constant 0 : i32
    %c0_i32_1 = arith.constant 0 : i32
    return %c0_i32, %arg0, %c0_i32_0 : i32, i32, i32
  }
  func.func @transform_2(%arg0: i32, %arg1: memref<5xi32, #tpu.memory_space<smem>>, %arg2: memref<5xi32, #tpu.memory_space<smem>>) -> (i32, i32, i32) {
    %c0_i32 = arith.constant 0 : i32
    %c0_i32_0 = arith.constant 0 : i32
    %c0_i32_1 = arith.constant 0 : i32
    return %c0_i32, %arg0, %c0_i32_0 : i32, i32, i32
  }
  func.func @transform_3(%arg0: i32, %arg1: memref<5xi32, #tpu.memory_space<smem>>, %arg2: memref<5xi32, #tpu.memory_space<smem>>) -> (i32, i32, i32, i32) {
    %0 = arith.index_cast %arg0 : i32 to index
    %1 = memref.load %arg2[%0] : memref<5xi32, #tpu.memory_space<smem>>
    %c0_i32 = arith.constant 0 : i32
    %c0_i32_0 = arith.constant 0 : i32
    %c0_i32_1 = arith.constant 0 : i32
    %c0_i32_2 = arith.constant 0 : i32
    return %1, %c0_i32, %c0_i32_0, %c0_i32_1 : i32, i32, i32, i32
  }
}

</mosaic_0001>

<bundles_post_ra>
// kernel: tpu_custom_call.1
= control target key start
LH: loop header
LB: loop body
LE: loop exit
PB: predicated region body
PF: predicated region fallthrough
CT: control target
= control target key end

     0   :  { %s1273_s18 = smov [#allocation3]   ;;  %s1724_s0 = inlined_call_operand.hbm [shape: s32[5], index: 0, kind: input, shape index: {}]   ;;  %s1725_s2 = inlined_call_operand.hbm [shape: f32[1280,128], index: 2, kind: input, shape index: {}]   ;;  %s1726_s3 = inlined_call_operand.hbm [shape: bf16[2,1280,128], index: 3, kind: input, shape index: {}]   ;;  %s1727_s4 = inlined_call_operand.hbm [shape: bf16[2,1280,128], index: 4, kind: input, shape index: {}]   ;;  %s1728_s5 = inlined_call_operand.hbm [shape: f32[2,2,8,128], index: 5, kind: output, shape index: {}]   ;;  %s1729_s1 = inlined_call_operand.vmem [shape: s32[5], index: 1, kind: input, shape index: {}]  }
   0x1   :  { %1731 = sst [smem:[#allocation23_spill]] %s1725_s2  ;;  %s12_s23 = sshll.u32 %s1729_s1, 4  ;;  %s13_s23 = int_to_ptr.vmem [resolvable:$true] %s12_s23 }
   0x2   :  { %1732 = sst [smem:[#allocation24_spill]] %s1726_s3  ;;  %s1131_s24 = scalar_lea.vmem %s13_s23, 16 }
   0x3   :  { %11 = dma.hbm_to_smem %s1724_s0, 16, %s1273_s18, [#allocation2] }
   0x4   :  { %p1132_p0 = scmp.ne.s32.totalorder %s13_s23, %s1131_s24  ;;  %p1136_p1 = scmp.lt.s32.totalorder %s13_s23, %s13_s23 }
   0x5   :  { %p1137_p2 = scmp.lt.s32.totalorder %s1131_s24, %s1131_s24 }
   0x7   :  { %p1138_p3 = por %p1137_p2, %p1136_p1 }
   0x9   :  { %p1139_p4 = pnand %p1138_p3, %p1132_p0 }
   0xb   :  { %1142 = shalt.err (!%p1139_p4)  }
   0xc   :  { %s1274_s25 = smov [#allocation4]  }
   0xd   :  { %15 = dma.vmem_to_smem %s13_s23, 16, %s1274_s25, [#allocation2] }
   0xe   :  { %1227 = dma.done.wait [#allocation2], 32 }
   0xf   :  { %1228 = vsyncadd [#allocation2], 4294967264 }
  0x10   :  { %17 = sfence }
  0x11   :  { %18 = vsyncpa [#allocation6], 0 }
  0x12   :  { %20 = vsyncpa [#allocation6 + $0x1], 0 }
  0x13   :  { %21 = vsyncpa [#allocation9], 0 }
  0x14   :  { %23 = vsyncpa [#allocation9 + $0x1], 0 }
  0x15   :  { %24 = vsyncpa [#allocation7], 0 }
  0x16   :  { %26 = vsyncpa [#allocation7 + $0x1], 0  ;;  %s1330_s0 = smov 0   ;;  %s1332_s1 = smov 0  }
  0x17   :  { %s1334_s26 = smov 0   ;;  %s1336_s27 = smov 0  }
  0x18   :  { %s1338_s28 = smov 0   ;;  %s1340_s29 = smov 0  }
  0x19   :  { %s1342_s30 = smov 0  }
  0x1a LB: > { %s1364_s6 = sadd.s32 4294967295, %s1267_s30   ;;  %s1367_s7 = sadd.s32 1, %s1267_s30   ;;  %s1267_s30 = sphi %s1342_s30, %s1747_s30   ;;  %s1263_s29 = sphi %s1340_s29, %s1746_s29   ;;  %s1259_s28 = sphi %s1338_s28, %s1745_s28   ;;  %s1255_s27 = sphi %s1336_s27, %s1744_s27   ;;  %s1251_s26 = sphi %s1334_s26, %s1743_s26   ;;  %s1247_s1 = sphi %s1332_s1, %s1742_s1   ;;  %s1243_s0 = sphi %s1330_s0, %s1741_s0  }
  0x1b   : > { %s39_s8 = sadd.s32 1, %s1263_s29  ;;  %s36_s9 = ssub.s32 %s1267_s30, %s1367_s7 }
  0x1c   : > { %p46_p5 = scmp.ne.s32.totalorder %s1263_s29, %s1259_s28  ;;  %p37_p6 = scmp.eq.s32.totalorder %s36_s9, 0 }
  0x1d   : > { %p47_p7 = scmp.eq.s32.totalorder %s1267_s30, 0  ;;  %p52_p8 = scmp.ne.s32.totalorder %s1259_s28, %s1255_s27 }
  0x1e   : > { %p53_p9 = scmp.eq.s32.totalorder %s1364_s6, 0  ;;  %s783_s13 = sadd.s32 4294967294, %s1267_s30  }
  0x1f   : > { %s1378_s10 = scalar_select %p37_p6, %s1263_s29, %s39_s8  }
  0x20   : > { %p1380_p10 = por %p47_p7, %p46_p5  ;;  %p1384_p11 = por %p53_p9, %p52_p8 }
  0x21   : > { %s114_s14 = sld [smem:[#allocation4 + %s1267_s30]]  ;;  %p129_p12 = scmp.ne.s32.totalorder %s1251_s26, %s1247_s1 }
  0x22   : > { %s115_s15 = sld [smem:[#allocation4 + %s1367_s7]]  ;;  %p130_p13 = scmp.eq.s32.totalorder %s1364_s6, 4 }
  0x23   : > { %p135_p0 = scmp.ne.s32.totalorder %s1247_s1, %s1243_s0  ;;  %p136_p1 = scmp.eq.s32.totalorder %s783_s13, 4 }
  0x24   : > { %p1396_p2 = por %p130_p13, %p129_p12  ;;  %s119_s19 = sadd.s32 1, %s1251_s26 }
  0x25   : > { %p1400_p3 = por %p136_p1, %p135_p0  ;;  %p785_p5 = scmp.ge.s32.totalorder %s1267_s30, 5 }
  0x26   : > { %s1735_s16 = scalar_select %p1396_p2, 1, 0 }
  0x27   : > { %s1736_s17 = scalar_select %p1400_p3, 1, 0 }
  0x28   : > { %s116_s18 = ssub.s32 %s114_s14, %s115_s15  ;;  %152 = sbr.rel (%p785_p5) target bundleno = 98 (0x62), region = 16 }
  0x29   : > { %p117_p4 = scmp.eq.s32.totalorder %s116_s18, 0  ;;  %s156_s21 = sand.u32 (!%p785_p5), 1, %s1263_s29  }
  0x2a   : > { %s849_s22 = sshll.u32 (!%p785_p5), %s1267_s30, 12  ;;  %s1411_s23 = sshll.u32 (!%p785_p5), %s156_s21, 8 }
  0x2b   : > { %s1406_s20 = scalar_select %p117_p4, %s1251_s26, %s119_s19  }
  0x2c   : > { %s1737_s2 = sld [smem:[#allocation23_spill]] (!%p785_p5)  ;;  %s160_s8 = scalar_lea.vmem (!%p785_p5), [#allocation5], %s1411_s23 }
  0x2d   : > { %s167_s9 = sshll.u32 %s160_s8, 4  ;;  %s1421_s13 = scalar_lea.sflag [#allocation6], %s156_s21  ;;  %s1419_s9 = int_to_ptr.vmem [resolvable:$true] %s167_s9 }
  0x32   : > { %s1416_s27 = scalar_lea.hbm %s1737_s2, %s849_s22  ;;  %s1147_s19 = scalar_lea.hbm %s1737_s2, 20480 }
  0x33   : > { %s1143_s14 = scalar_lea.hbm %s1416_s27, 4096  ;;  %p1148_p9 = scmp.lt.s32.totalorder %s1416_s27, %s1737_s2 }
  0x34   : > { %p1144_p6 = scmp.ne.s32.totalorder %s1416_s27, %s1143_s14  ;;  %p1149_p12 = scmp.lt.s32.totalorder %s1147_s19, %s1143_s14 }
  0x36   : > { %p1145_p7 = pnand %p1144_p6, %p1380_p10  ;;  %p1150_p13 = por %p1149_p12, %p1148_p9 }
  0x38   : > { %p1146_p8 = pneg %p1145_p7 }
  0x3a   : > { %p1151_p0 = pnand %p1150_p13, %p1146_p8 }
  0x3c   : > { %1154 = shalt.err (!%p1151_p0)
}
  0x3d   : > { %s1155_s21 = scalar_lea.vmem %s1419_s9, 4096  ;;  %s1275_s25 = smov [#allocation5]  }
  0x3e   : > { %p1156_p1 = scmp.ne.s32.totalorder %s1419_s9, %s1155_s21  ;;  %s1159_s8 = sshll.u32 %s1275_s25, 4  ;;  %s1160_s8 = int_to_ptr.vmem [resolvable:$false] %s1159_s8 }
  0x3f   : > { %s1161_s15 = scalar_lea.vmem %s1160_s8, 8192  ;;  %p1162_p6 = scmp.lt.s32.totalorder %s1419_s9, %s1160_s8 }
  0x40   : > { %p1157_p4 = pnand %p1156_p1, %p1380_p10  ;;  %p1163_p7 = scmp.lt.s32.totalorder %s1161_s15, %s1155_s21 }
  0x42   : > { %p1158_p5 = pneg %p1157_p4  ;;  %p1164_p3 = por %p1163_p7, %p1162_p6 }
  0x44   : > { %p1165_p2 = pnand %p1164_p3, %p1158_p5 }
  0x46   : > { %1168 = shalt.err (!%p1165_p2)
}
  0x47   : > { %s1276_s14 = smov 128   ;;  %s1277_s18 = smov 8  }
  0x48   : > { %1011 = dma.hbm_to_vmem [thread:$0]  (%p1380_p10), %s1416_s27, 4096, %s1419_s9, %s1421_s13, %s1276_s14, %s1276_s14, %s1277_s18  }
  0x49   : > { %s177_s19 = sand.u32 1, %s1267_s30   ;;  %s850_s22 = sshll.u32 %s1267_s30, 11 }
  0x4a   : > { %s1738_s3 = sld [smem:[#allocation24_spill]]  ;;  %s181_s15 = scalar_lea.vmem [#allocation8], %s1411_s23 }
  0x4b   : > { %s1012_s8 = scalar_select %p1380_p10, [#allocation0], [#allocation16] }
  0x4c   : > { %s200_s27 = sshll.u32 %s181_s15, 4  ;;  %s1278_s13 = smov 10240   ;;  %s201_s27 = int_to_ptr.vmem [resolvable:$true] %s200_s27 }
  0x4d   : > { %s192_s9 = sld [smem:[%s1012_s8]]   ;;  %s1279_s14 = smov 2048  }
  0x4e   : > { %1013 = sst [smem:[#allocation13]] (%p1380_p10), %s1278_s13  ;;  %s1280_s18 = smov 32  }
  0x4f   : > { %1014 = sst [smem:[#allocation13 + $0x1]] (%p1380_p10), %s1279_s14  ;;  %s1281_s2 = smov 64  }
  0x50   : > { %s187_s25 = scalar_lea.hbm %s1738_s3, %s850_s22  ;;  %1015 = sst [smem:[#allocation13 + $0x2]] (%p1380_p10), %s1280_s18 }
  0x51   : > { %1016 = sst [smem:[#allocation13 + $0x3]] (%p1380_p10), %s1281_s2  ;;  %s1282_s21 = smov 4  }
  0x52   : > { %1017 = sst [smem:[#allocation13 + $0x4]] (%p1380_p10), %s1281_s2  ;;  %s178_s15 = scalar_lea.sflag [#allocation9], %s177_s19 }
  0x53   : > { %s792_s24 = sshll.u32 %s192_s9, 26  ;;  %1018 = sst [smem:[#allocation13 + $0x5]] (%p1380_p10), %s1282_s21 }
  0x54   : > { %s793_s8 = sadd.s32 134217728, %s792_s24  ;;  %s1283_s3 = smov 131072  }
  0x55   : > { %1019 = dma.general (%p1380_p10), %s187_s25, 4096, %s201_s27, %s178_s15, %s1283_s3, [#allocation13], %s793_s8, 0  }
  0x56   : > { %s233_s2 = scalar_lea.hbm %s1727_s4, %s850_s22  ;;  %s227_s18 = scalar_lea.vmem [#allocation10], %s1411_s23 }
  0x57   : > { %s1020_s9 = scalar_select %p1380_p10, [#allocation0], [#allocation17] }
  0x58   : > { %s246_s24 = sshll.u32 %s227_s18, 4  ;;  %s1284_s3 = smov 10240   ;;  %s247_s24 = int_to_ptr.vmem [resolvable:$true] %s246_s24 }
  0x59   : > { %s238_s19 = sld [smem:[%s1020_s9]]   ;;  %s1285_s25 = smov 2048  }
  0x5a   : > { %1021 = sst [smem:[#allocation15]] (%p1380_p10), %s1284_s3  ;;  %s1286_s27 = smov 32  }
  0x5b   : > { %1022 = sst [smem:[#allocation15 + $0x1]] (%p1380_p10), %s1285_s25  ;;  %s1287_s21 = smov 64  }
  0x5c   : > { %1023 = sst [smem:[#allocation15 + $0x2]] (%p1380_p10), %s1286_s27  ;;  %s1288_s23 = smov 4  }
  0x5d   : > { %1024 = sst [smem:[#allocation15 + $0x3]] (%p1380_p10), %s1287_s21  ;;  %s1289_s13 = smov 131072  }
  0x5e   : > { %1025 = sst [smem:[#allocation15 + $0x4]] (%p1380_p10), %s1287_s21 }
  0x5f   : > { %s797_s22 = sshll.u32 %s238_s19, 26  ;;  %1026 = sst [smem:[#allocation15 + $0x5]] (%p1380_p10), %s1288_s23 }
  0x60   : > { %s798_s8 = sadd.s32 134217728, %s797_s22 }
  0x61   : > { %1027 = dma.general (%p1380_p10), %s233_s2, 4096, %s247_s24, %s178_s15, %s1289_s13, [#allocation15], %s798_s8, 0  }
  0x62 PF: > { %p799_p2 = scmp.ge.s32.totalorder %s1267_s30, 1  ;;  %p267_p3 = scmp.lt.s32.totalorder %s1267_s30, 6 }
  0x64   : > { %p268_p8 = pnand %p799_p2, %p267_p3 }
  0x65   : > { %s273_s14 = sand.u32 (!%p268_p8), 1, %s1259_s28  }
  0x66   : > { %271 = sbr.rel (%p268_p8) target bundleno = 220 (0xdc), region = 32  ;;  %s1489_s9 = sshll.u32 (!%p268_p8), %s273_s14, 8 }
  0x67   : > { %s274_s18 = scalar_lea.sflag (!%p268_p8), [#allocation6], %s273_s14  ;;  %s277_s19 = scalar_lea.vmem (!%p268_p8), [#allocation5], %s1489_s9 }
  0x6b   : > { %1230 = dma.done.wait (%p1384_p11), %s274_s18, 4096  }
  0x6c   : > { %1232 = vsyncadd (%p1384_p11), %s274_s18, 4294963200  ;;  %s282_s11 = sand.u32 1, %s1364_s6   ;;  %s286_s2 = scalar_lea.vmem [#allocation8], %s1489_s9 }
  0x6d   : > { %s283_s15 = scalar_lea.sflag [#allocation9], %s282_s11 }
  0x6e   : > { %1234 = dma.done.wait (%p1384_p11), %s283_s15, 8192  }
  0x6f   : > { %1236 = vsyncadd (%p1384_p11), %s283_s15, 4294959104  ;;  %s325_s24 = sand.u32 1, %s1247_s1   ;;  %s332_s3 = sld [smem:[#allocation3 + %s1364_s6]] }
  0x70   : > { %s803_s25 = sshll.u32 %s325_s24, 4  ;;  %s295_s27 = scalar_lea.vmem [#allocation10], %s1489_s9 }
  0x71   : > { %s1507_s21 = scalar_lea.vmem [#allocation11], %s803_s25 }
  0x75   : > { %p804_p10 = scmp.ne.s32.totalorder %s332_s3, 1 }
  0x77   : > { %336 = sbr.rel (%p804_p10) target bundleno = 126 (0x7e), region = 48 }
  0x7c   : > { %v1290_v0 = vmov 0.0  }
  0x7d   : > { %337 = vst [vmem:[%s1507_s21] sm:$0xff] %v1290_v0  ;;  %338 = vst [vmem:[%s1507_s21 + $0x8] sm:$0xff] %v1290_v0 }
  0x7e PF: > { %s1511_s12 = smov 0  }
  0x7f LB: >> { %s805_s22 = sshll.u32 %s1271_s12, 7  ;;  %s344_s12 = sadd.s32 1, %s1271_s12   ;;  %s1271_s12 = sphi %s1511_s12, %s344_s12  }
  0x80   : >> { %s363_s23 = sshra.s32 %s805_s22, 3  ;;  %s1527_s18 = scalar_lea.vmem %s277_s19, %s805_s22 [#allocation5] }
  0x81   : >> { %s806_s8 = sshll.u32 %s363_s23, 2  ;;  %v1533_v6 = vld [vmem:[%s1527_s18] sm:$0xff]  ;;  %v1536_v7 = vld [vmem:[%s1527_s18 + $0x8] sm:$0xff]  ;;  %v1539_v9 = vld [vmem:[%s1527_s18 + $0x10] sm:$0xff]  ;;  %p341_p11 = scmp.ge.s32.totalorder %s344_s12, 2  }
  0x82   : >> { %s1519_s13 = scalar_lea.vmem %s295_s27, %s806_s8 [#allocation10]  ;;  %s1523_s14 = scalar_lea.vmem %s286_s2, %s806_s8 [#allocation8]  ;;  %v1546_v17 = vld [vmem:[%s1527_s18 + $0x18] sm:$0xff]  ;;  %v1550_v21 = vld [vmem:[%s1527_s18 + $0x20] sm:$0xff]  ;;  %v1556_v29 = vld [vmem:[%s1527_s18 + $0x28] sm:$0xff] }
  0x83   : >> { %v886_v1 = vld [vmem:[%s1519_s13] sm:$0xff]   ;;  %v988_v2 = vld [vmem:[%s1519_s13 + $0x8] sm:$0xff]   ;;  %v989_v12 = vld [vmem:[%s1519_s13 + $0x10] sm:$0xff]   ;;  %p1739_p9 = scmp.ne.s32.totalorder (%p341_p11), %s1735_s16, 0  ;;  %s650_s3 = sshll.u32 (%p341_p11), %s1507_s21, 4  ;;  %s1666_s3 = int_to_ptr.vmem [resolvable:$true] %s650_s3 }
  0x84   : >> { %v854_v3 = vld [vmem:[%s1523_s14] sm:$0xff]   ;;  %v887_v4 = vunpack.c.l.bf16 %v886_v1  ;;  %v888_v5 = vunpack.c.h.bf16 %v886_v1  ;;  %v891_v8 = vunpack.c.l.bf16 %v988_v2  ;;  %v981_v11 = vld [vmem:[%s1523_s14 + $0x8] sm:$0xff]   ;;  %v892_v14 = vunpack.c.h.bf16 %v988_v2  ;;  %v982_v23 = vld [vmem:[%s1523_s14 + $0x10] sm:$0xff]   ;;  %s1675_s19 = scalar_lea.sflag (%p341_p11), [#allocation7], %s325_s24  ;;  %s1169_s2 = scalar_lea.vmem (%p341_p11), %s1666_s3, 256 }
  0x85   : >> { %v855_v10 = vunpack.c.l.bf16 %v854_v3  ;;  %v856_v13 = vunpack.c.h.bf16 %v854_v3  ;;  %v859_v18 = vunpack.c.l.bf16 %v981_v11  ;;  %v895_v19 = vunpack.c.l.bf16 %v989_v12  ;;  %v990_v24 = vld [vmem:[%s1519_s13 + $0x18] sm:$0xff]   ;;  %v1561_v35 = vld [vmem:[%s1527_s18 + $0x30] sm:$0xff]  ;;  %v991_v38 = vld [vmem:[%s1519_s13 + $0x20] sm:$0xff]   ;;  %p1170_p12 = scmp.ne.s32.totalorder (%p341_p11), %s1666_s3, %s1169_s2 }
  0x86   : >> { %v433_v15 = vsub.f32 %v1533_v6, %v887_v4  ;;  %v434_v16 = vsub.f32 %v1536_v7, %v888_v5  ;;  %v435_v20 = vsub.f32 %v1539_v9, %v891_v8  ;;  %v860_v22 = vunpack.c.h.bf16 %v981_v11  ;;  %v983_v31 = vld [vmem:[%s1523_s14 + $0x18] sm:$0xff]   ;;  %v984_v45 = vld [vmem:[%s1523_s14 + $0x20] sm:$0xff]   ;;  %v992_v47 = vld [vmem:[%s1519_s13 + $0x28] sm:$0xff]  }
  0x87   : >> { %v896_v25 = vunpack.c.h.bf16 %v989_v12  ;;  %v436_v26 = vsub.f32 %v1546_v17, %v892_v14  ;;  %v863_v30 = vunpack.c.l.bf16 %v982_v23  ;;  %v899_v32 = vunpack.c.l.bf16 %v990_v24  ;;  %v1566_v43 = vld [vmem:[%s1527_s18 + $0x38] sm:$0xff]  ;;  %v1572_v51 = vld [vmem:[%s1527_s18 + $0x40] sm:$0xff]  ;;  %v1575_v54 = vld [vmem:[%s1523_s14 + $0x28] sm:$0xff]   ;;  %p1171_p13 = pnand (%p341_p11), %p1170_p12, %p1739_p9 }
  0x88   : >> { %v449_v27 = vmul.f32 %v855_v10, %v433_v15  ;;  %v450_v28 = vmul.f32 %v856_v13, %v434_v16  ;;  %v437_v33 = vsub.f32 %v1550_v21, %v895_v19  ;;  %v451_v34 = vmul.f32 %v859_v18, %v435_v20  ;;  %v1578_v55 = vld [vmem:[%s1523_s14 + $0x30] sm:$0xff]   ;;  %v1582_v60 = vld [vmem:[%s1527_s18 + $0x48] sm:$0xff]  ;;  %v1585_v0 = vld [vmem:[%s1523_s14 + $0x38] sm:$0xff]  }
  0x89   : >> { %v864_v36 = vunpack.c.h.bf16 %v982_v23  ;;  %v900_v37 = vunpack.c.h.bf16 %v990_v24  ;;  %v438_v39 = vsub.f32 %v1556_v29, %v896_v25  ;;  %v452_v40 = vmul.f32 %v860_v22, %v436_v26  ;;  %v993_v1 = vld [vmem:[%s1519_s13 + $0x30] sm:$0xff]   ;;  %v994_v14 = vld [vmem:[%s1519_s13 + $0x38] sm:$0xff]   ;;  %v1003_v20 = vld [vmem:[%s1519_s13 + $0x80] sm:$0xff]   ;;  %p1172_p0 = pneg (%p341_p11), %p1171_p13 }
  0x8a   : >> { %v465_v41 = vmul.f32 %v449_v27, %v449_v27  ;;  %v466_v42 = vmul.f32 %v450_v28, %v450_v28  ;;  %v867_v44 = vunpack.c.l.bf16 %v983_v31  ;;  %v903_v46 = vunpack.c.l.bf16 %v991_v38  ;;  %v1590_v8 = vld [vmem:[%s1527_s18 + $0x50] sm:$0xff]  ;;  %v1599_v22 = vld [vmem:[%s1527_s18 + $0x58] sm:$0xff]  ;;  %v1604_v27 = vld [vmem:[%s1527_s18 + $0x60] sm:$0xff] }
  0x8b   : >> { %v439_v48 = vsub.f32 %v1561_v35, %v899_v32  ;;  %v453_v49 = vmul.f32 %v863_v30, %v437_v33  ;;  %v467_v50 = vmul.f32 %v451_v34, %v451_v34  ;;  %v868_v52 = vunpack.c.h.bf16 %v983_v31  ;;  %v1607_v28 = vld [vmem:[%s1527_s18 + $0x68] sm:$0xff] }
  0x8c   : >> { %v904_v53 = vunpack.c.h.bf16 %v991_v38  ;;  %v440_v56 = vsub.f32 %v1566_v43, %v900_v37  ;;  %v454_v57 = vmul.f32 %v864_v36, %v438_v39  ;;  %v468_v58 = vmul.f32 %v452_v40, %v452_v40  ;;  %v1004_v34 = vld [vmem:[%s1519_s13 + $0x88] sm:$0xff]   ;;  %v995_v38 = vld [vmem:[%s1523_s14 + $0x80] sm:$0xff]  }
  0x8d   : >> { %v481_v59 = vadd.f32 %v466_v42, %v465_v41  ;;  %v871_v61 = vunpack.c.l.bf16 %v984_v45  ;;  %v872_v62 = vunpack.c.h.bf16 %v984_v45  ;;  %v907_v63 = vunpack.c.l.bf16 %v992_v47 }
  0x8e   : >> { %v441_v2 = vsub.f32 %v1572_v51, %v903_v46  ;;  %v455_v3 = vmul.f32 %v867_v44, %v439_v48  ;;  %v469_v4 = vmul.f32 %v453_v49, %v453_v49  ;;  %v875_v10 = vunpack.c.l.bf16 %v1575_v54  ;;  %v1615_v46 = vld [vmem:[%s1527_s18 + $0x70] sm:$0xff] }
  0x8f   : >> { %v482_v5 = vadd.f32 %v481_v59, %v467_v50  ;;  %v876_v11 = vunpack.c.h.bf16 %v1575_v54  ;;  %v879_v12 = vunpack.c.l.bf16 %v1578_v55  ;;  %v908_v13 = vunpack.c.h.bf16 %v992_v47 }
  0x90   : >> { %v442_v15 = vsub.f32 %v1582_v60, %v904_v53  ;;  %v456_v16 = vmul.f32 %v868_v52, %v440_v56  ;;  %v470_v18 = vmul.f32 %v454_v57, %v454_v57  ;;  %v880_v23 = vunpack.c.h.bf16 %v1578_v55  ;;  %v1620_v52 = vld [vmem:[%s1527_s18 + $0x78] sm:$0xff]  ;;  %v996_v57 = vld [vmem:[%s1523_s14 + $0x88] sm:$0xff]  }
  0x91   : >> { %v483_v19 = vadd.f32 %v482_v5, %v468_v58  ;;  %v883_v24 = vunpack.c.l.bf16 %v1585_v0  ;;  %v911_v25 = vunpack.c.l.bf16 %v993_v1  ;;  %v912_v26 = vunpack.c.h.bf16 %v993_v1  ;;  %v1005_v58 = vld [vmem:[%s1519_s13 + $0x90] sm:$0xff]  }
  0x92   : >> { %v443_v30 = vsub.f32 %v1590_v8, %v907_v63  ;;  %v457_v31 = vmul.f32 %v871_v61, %v441_v2  ;;  %v471_v32 = vmul.f32 %v455_v3, %v455_v3  ;;  %v884_v36 = vunpack.c.h.bf16 %v1585_v0 }
  0x93   : >> { %v484_v33 = vadd.f32 %v483_v19, %v469_v4  ;;  %v915_v37 = vunpack.c.l.bf16 %v994_v14  ;;  %v951_v39 = vunpack.c.l.bf16 %v1003_v20  ;;  %v952_v40 = vunpack.c.h.bf16 %v1003_v20  ;;  %v997_v19 = vld [vmem:[%s1523_s14 + $0x90] sm:$0xff]  }
  0x94   : >> { %v444_v41 = vsub.f32 %v1599_v22, %v908_v13  ;;  %v458_v42 = vmul.f32 %v872_v62, %v442_v15  ;;  %v472_v44 = vmul.f32 %v456_v16, %v456_v16  ;;  %v916_v47 = vunpack.c.h.bf16 %v994_v14 }
  0x95   : >> { %v485_v45 = vadd.f32 %v484_v33, %v470_v18  ;;  %v445_v48 = vsub.f32 %v1604_v27, %v911_v25  ;;  %v446_v49 = vsub.f32 %v1607_v28, %v912_v26  ;;  %v955_v50 = vunpack.c.l.bf16 %v1004_v34 }
  0x96   : >> { %v459_v53 = vmul.f32 %v875_v10, %v443_v30  ;;  %v473_v54 = vmul.f32 %v457_v31, %v457_v31  ;;  %v919_v56 = vunpack.c.l.bf16 %v995_v38  ;;  %v920_v59 = vunpack.c.h.bf16 %v995_v38 }
  0x97   : >> { %v486_v55 = vadd.f32 %v485_v45, %v471_v32  ;;  %v956_v61 = vunpack.c.h.bf16 %v1004_v34  ;;  %v568_v62 = vsub.f32 %v1533_v6, %v951_v39  ;;  %v569_v63 = vsub.f32 %v1536_v7, %v952_v40  ;;  %v1006_v6 = vld [vmem:[%s1519_s13 + $0x98] sm:$0xff]  }
  0x98   : >> { %v447_v0 = vsub.f32 %v1615_v46, %v915_v37  ;;  %v460_v1 = vmul.f32 %v876_v11, %v444_v41  ;;  %v474_v2 = vmul.f32 %v458_v42, %v458_v42  ;;  %v448_v4 = vsub.f32 %v1620_v52, %v916_v47  ;;  %v998_v34 = vld [vmem:[%s1523_s14 + $0x98] sm:$0xff]  }
  0x99   : >> { %v487_v3 = vadd.f32 %v486_v55, %v472_v44  ;;  %v923_v5 = vunpack.c.l.bf16 %v996_v57  ;;  %v959_v10 = vunpack.c.l.bf16 %v1005_v58  ;;  %v570_v13 = vsub.f32 %v1539_v9, %v955_v50  ;;  %v999_v50 = vld [vmem:[%s1523_s14 + $0xa0] sm:$0xff]  }
  0x9a   : >> { %v461_v14 = vmul.f32 %v879_v12, %v445_v48  ;;  %v475_v15 = vmul.f32 %v459_v53, %v459_v53  ;;  %v924_v18 = vunpack.c.h.bf16 %v996_v57  ;;  %v960_v20 = vunpack.c.h.bf16 %v1005_v58 }
  0x9b   : >> { %v488_v16 = vadd.f32 %v487_v3, %v473_v54  ;;  %v571_v7 = vsub.f32 %v1546_v17, %v956_v61  ;;  %v584_v11 = vmul.f32 %v919_v56, %v568_v62  ;;  %v585_v25 = vmul.f32 %v920_v59, %v569_v63  ;;  %v1007_v17 = vld [vmem:[%s1519_s13 + $0xa0] sm:$0xff]   ;;  %v1008_v54 = vld [vmem:[%s1519_s13 + $0xa8] sm:$0xff]  }
  0x9c   : >> { %v462_v26 = vmul.f32 %v880_v23, %v446_v49  ;;  %v463_v30 = vmul.f32 %v883_v24, %v447_v0  ;;  %v476_v31 = vmul.f32 %v460_v1, %v460_v1  ;;  %v927_v33 = vunpack.c.l.bf16 %v997_v19 }
  0x9d   : >> { %v489_v32 = vadd.f32 %v488_v16, %v474_v2  ;;  %v963_v9 = vunpack.c.l.bf16 %v1006_v6  ;;  %v572_v12 = vsub.f32 %v1550_v21, %v959_v10  ;;  %v586_v37 = vmul.f32 %v923_v5, %v570_v13  ;;  %v1009_v5 = vld [vmem:[%s1519_s13 + $0xb0] sm:$0xff]  }
  0x9e   : >> { %v477_v38 = vmul.f32 %v461_v14, %v461_v14  ;;  %v928_v40 = vunpack.c.h.bf16 %v997_v19  ;;  %v964_v41 = vunpack.c.h.bf16 %v1006_v6  ;;  %v573_v42 = vsub.f32 %v1556_v29, %v960_v20 }
  0x9f   : >> { %v490_v39 = vadd.f32 %v489_v32, %v475_v15  ;;  %v587_v44 = vmul.f32 %v924_v18, %v571_v7  ;;  %v600_v23 = vmul.f32 %v584_v11, %v584_v11  ;;  %v601_v24 = vmul.f32 %v585_v25, %v585_v25  ;;  %v496_v18 = vld [vmem:[%s1507_s21] sm:$0xff] }
  0xa0   : >> { %v464_v45 = vmul.f32 %v884_v36, %v448_v4  ;;  %v478_v47 = vmul.f32 %v462_v26, %v462_v26  ;;  %v931_v49 = vunpack.c.l.bf16 %v998_v34  ;;  %v967_v53 = vunpack.c.l.bf16 %v1007_v17  ;;  %v1000_v4 = vld [vmem:[%s1523_s14 + $0xa8] sm:$0xff]  }
  0xa1   : >> { %v491_v48 = vadd.f32 %v490_v39, %v476_v31  ;;  %v574_v21 = vsub.f32 %v1561_v35, %v963_v9  ;;  %v588_v55 = vmul.f32 %v927_v33, %v572_v12  ;;  %v602_v56 = vmul.f32 %v586_v37, %v586_v37 }
  0xa2   : >> { %v479_v57 = vmul.f32 %v463_v30, %v463_v30  ;;  %v932_v59 = vunpack.c.h.bf16 %v998_v34  ;;  %v968_v29 = vunpack.c.h.bf16 %v1007_v17  ;;  %v575_v61 = vsub.f32 %v1566_v43, %v964_v41  ;;  %v1001_v30 = vld [vmem:[%s1523_s14 + $0xb0] sm:$0xff]  }
  0xa3   : >> { %v492_v58 = vadd.f32 %v491_v48, %v477_v38  ;;  %v589_v62 = vmul.f32 %v928_v40, %v573_v42  ;;  %v603_v36 = vmul.f32 %v587_v44, %v587_v44  ;;  %v616_v63 = vadd.f32 %v601_v24, %v600_v23  ;;  %v1002_v42 = vld [vmem:[%s1523_s14 + $0xb8] sm:$0xff]  }
  0xa4   : >> { %v480_v0 = vmul.f32 %v464_v45, %v464_v45  ;;  %v935_v2 = vunpack.c.l.bf16 %v999_v50  ;;  %v971_v3 = vunpack.c.l.bf16 %v1008_v54  ;;  %v576_v35 = vsub.f32 %v1572_v51, %v967_v53  ;;  %v1010_v51 = vld [vmem:[%s1519_s13 + $0xb8] sm:$0xff]  }
  0xa5   : >> { %v493_v1 = vadd.f32 %v492_v58, %v478_v47  ;;  %v590_v10 = vmul.f32 %v931_v49, %v574_v21  ;;  %v604_v13 = vmul.f32 %v588_v55, %v588_v55  ;;  %v617_v14 = vadd.f32 %v616_v63, %v602_v56 }
  0xa6   : >> { %v936_v16 = vunpack.c.h.bf16 %v999_v50  ;;  %v972_v43 = vunpack.c.h.bf16 %v1008_v54  ;;  %v577_v19 = vsub.f32 %v1582_v60, %v968_v29  ;;  %v591_v6 = vmul.f32 %v932_v59, %v575_v61 }
  0xa7   : >> { %v494_v15 = vadd.f32 %v493_v1, %v479_v57  ;;  %v605_v20 = vmul.f32 %v589_v62, %v589_v62  ;;  %v618_v7 = vadd.f32 %v617_v14, %v603_v36  ;;  %v939_v25 = vunpack.c.l.bf16 %v1000_v4 }
  0xa8   : >> { %v975_v26 = vunpack.c.l.bf16 %v1009_v5  ;;  %v578_v31 = vsub.f32 %v1590_v8, %v971_v3  ;;  %v592_v32 = vmul.f32 %v935_v2, %v576_v35  ;;  %v606_v33 = vmul.f32 %v590_v10, %v590_v10 }
  0xa9   : >> { %v495_v11 = vadd.f32 %v494_v15, %v480_v0  ;;  %v619_v34 = vadd.f32 %v618_v7, %v604_v13  ;;  %v940_v12 = vunpack.c.h.bf16 %v1000_v4  ;;  %v976_v37 = vunpack.c.h.bf16 %v1009_v5  ;;  %v842_v5 = vld [vmem:[%s1507_s21 + $0x8] sm:$0xff] }
  0xaa   : >> { %v579_v60 = vsub.f32 %v1599_v22, %v972_v43  ;;  %v593_v38 = vmul.f32 %v936_v16, %v577_v19  ;;  %v607_v39 = vmul.f32 %v591_v6, %v591_v6  ;;  %v943_v41 = vunpack.c.l.bf16 %v1001_v30 }
  0xab   : >> { %v497_v9 = vadd.f32 %v496_v18, %v495_v11  ;;  %v620_v40 = vadd.f32 %v619_v34, %v605_v20  ;;  %v979_v17 = vunpack.c.l.bf16 %v1010_v51  ;;  %v580_v44 = vsub.f32 %v1604_v27, %v975_v26 }
  0xac   : >> { %v594_v23 = vmul.f32 %v939_v25, %v578_v31  ;;  %v608_v24 = vmul.f32 %v592_v32, %v592_v32  ;;  %v944_v45 = vunpack.c.h.bf16 %v1001_v30  ;;  %v980_v47 = vunpack.c.h.bf16 %v1010_v51 }
  0xad   : >> { %498 = vst [vmem:[%s1507_s21] sm:$0xff] %v497_v9  ;;  %v621_v8 = vadd.f32 %v620_v40, %v606_v33  ;;  %v581_v48 = vsub.f32 %v1607_v28, %v976_v37  ;;  %v595_v49 = vmul.f32 %v940_v12, %v579_v60  ;;  %v609_v50 = vmul.f32 %v593_v38, %v593_v38 }
  0xae   : >> { %v947_v22 = vunpack.c.l.bf16 %v1002_v42  ;;  %v582_v54 = vsub.f32 %v1615_v46, %v979_v17  ;;  %v596_v21 = vmul.f32 %v943_v41, %v580_v44  ;;  %v610_v55 = vmul.f32 %v594_v23, %v594_v23 }
  0xaf   : >> { %v622_v53 = vadd.f32 %v621_v8, %v607_v39  ;;  %v948_v57 = vunpack.c.h.bf16 %v1002_v42  ;;  %v583_v27 = vsub.f32 %v1620_v52, %v980_v47  ;;  %v597_v58 = vmul.f32 %v944_v45, %v581_v48 }
  0xb0   : >> { %v611_v59 = vmul.f32 %v595_v49, %v595_v49  ;;  %v598_v61 = vmul.f32 %v947_v22, %v582_v54  ;;  %v612_v62 = vmul.f32 %v596_v21, %v596_v21 }
  0xb1   : >> { %v623_v56 = vadd.f32 %v622_v53, %v608_v24  ;;  %v599_v36 = vmul.f32 %v948_v57, %v583_v27  ;;  %v613_v63 = vmul.f32 %v597_v58, %v597_v58 }
  0xb2   : >> { %v614_v1 = vmul.f32 %v598_v61, %v598_v61 }
  0xb3   : >> { %v624_v29 = vadd.f32 %v623_v56, %v609_v50  ;;  %v615_v46 = vmul.f32 %v599_v36, %v599_v36 }
  0xb5   : >> { %v625_v28 = vadd.f32 %v624_v29, %v610_v55 }
  0xb7   : >> { %v626_v0 = vadd.f32 %v625_v28, %v611_v59 }
  0xb9   : >> { %v627_v2 = vadd.f32 %v626_v0, %v612_v62 }
  0xbb   : >> { %v628_v3 = vadd.f32 %v627_v2, %v613_v63 }
  0xbd   : >> { %v629_v4 = vadd.f32 %v628_v3, %v614_v1 }
  0xbf   : >> { %v630_v35 = vadd.f32 %v629_v4, %v615_v46  ;;  %343 = sbr.rel (!%p341_p11) target bundleno = 127 (0x7f), region = 128 }
  0xc1   : >> { %v633_v10 = vadd.f32 %v842_v5, %v630_v35 }
  0xc3   : >> { %843 = vst [vmem:[%s1507_s21 + $0x8] sm:$0xff] %v633_v10 }
  0xc4   : > { %s1031_s11 = scalar_select %p1739_p9, [#allocation4], [#allocation18] }
  0xc5   : > { %s1749_s6 = smov (!%p1739_p9, %s1364_s6), 0 }
  0xc6   : > { %s643_s15 = sld [smem:[%s1031_s11 + %s1749_s6]]  ;;  %s1291_s6 = smov [#allocation11]  }
  0xc7   : > { %s1173_s27 = sshll.u32 %s1291_s6, 4  ;;  %s1174_s27 = int_to_ptr.vmem [resolvable:$false] %s1173_s27 }
  0xc8   : > { %s1175_s21 = scalar_lea.vmem %s1174_s27, 512  ;;  %p1176_p1 = scmp.lt.s32.totalorder %s1666_s3, %s1174_s27 }
  0xc9   : > { %p1177_p4 = scmp.lt.s32.totalorder %s1175_s21, %s1169_s2 }
  0xcb   : > { %p1178_p5 = por %p1177_p4, %p1176_p1 }
  0xcc   : > { %s852_s25 = sshll.u32 %s643_s15, 8 }
  0xcd   : > { %s1671_s9 = scalar_lea.hbm %s1728_s5, %s852_s25  ;;  %p1179_p6 = pnand %p1178_p5, %p1172_p0 }
  0xcf   : > { %1182 = shalt.err (!%p1179_p6)
}
  0xd0   : > { %s1183_s24 = scalar_lea.hbm %s1671_s9, 256  ;;  %s1187_s13 = scalar_lea.hbm %s1728_s5, 512 }
  0xd1   : > { %p1184_p7 = scmp.ne.s32.totalorder %s1671_s9, %s1183_s24  ;;  %p1188_p8 = scmp.lt.s32.totalorder %s1671_s9, %s1728_s5 }
  0xd2   : > { %p1189_p10 = scmp.lt.s32.totalorder %s1187_s13, %s1183_s24 }
  0xd3   : > { %p1185_p2 = pnand %p1184_p7, %p1739_p9 }
  0xd4   : > { %p1190_p11 = por %p1189_p10, %p1188_p8 }
  0xd5   : > { %p1186_p3 = pneg %p1185_p2 }
  0xd7   : > { %p1191_p12 = pnand %p1190_p11, %p1186_p3 }
  0xd9   : > { %1194 = shalt.err (!%p1191_p12)
}
  0xda   : > { %s1292_s11 = smov 128   ;;  %s1293_s15 = smov 8  }
  0xdb   : > { %1033 = dma.vmem_to_hbm [thread:$0]  (%p1739_p9), %s1666_s3, 256, %s1671_s9, %s1675_s19, %s1292_s11, %s1292_s11, %s1293_s15  }
  0xdc PF: > { %p1039_p13 = scmp.ge.s32.totalorder %s1267_s30, 2  ;;  %s665_s25 = sand.u32 1, %s1243_s0  }
  0xdd   : > { %p1740_p0 = scmp.ne.s32.totalorder %s1736_s17, 0  ;;  %s666_s12 = scalar_lea.sflag [#allocation7], %s665_s25 }
  0xdf   : > { %p1036_p1 = pnand %p1039_p13, %p1740_p0 }
  0xe1   : > { %p1037_p4 = pneg %p1036_p1 }
  0xe3   : > { %1238 = dma.done.wait (%p1037_p4), %s666_s12, 256  }
  0xe4   : > { %1240 = vsyncadd (%p1037_p4), %s666_s12, 4294967040  ;;  %p29_p9 = scmp.ge.s32.totalorder %s1367_s7, 7   ;;  %s1741_s0 = smov %s1247_s1 }
  0xe5   : > { %s1742_s1 = smov %s1251_s26  ;;  %s1743_s26 = smov %s1406_s20 }
  0xe6   : > { %s1744_s27 = smov %s1259_s28  ;;  %s1745_s28 = smov %s1263_s29 }
  0xe7   : > { %s1746_s29 = smov %s1378_s10  ;;  %s1747_s30 = smov %s1367_s7 }
  0xe8   :  { %31 = sbr.rel (!%p29_p9) target bundleno = 26 (0x1a), region = 139 }
  0xed   :  { %671 = vsyncpa [#allocation6], 1 }
  0xee   :  { %673 = vsyncpa [#allocation6 + $0x1], 1 }
  0xef   :  { %674 = vsyncpa [#allocation9], 1 }
  0xf0   :  { %676 = vsyncpa [#allocation9 + $0x1], 1 }
  0xf1   :  { %677 = vsyncpa [#allocation7], 1 }
  0xf2   :  { %679 = vsyncpa [#allocation7 + $0x1], 1 }

</bundles_post_ra>
